<compile_context>
chip_gen: v7x
topology: tpu7x:2x2x1
jax: 0.10.0
libtpu: 0.0.40
codegen_flags: <defaults>
</compile_context>

<pallas_src>
from collections import OrderedDict

import jax
import jax.numpy as jnp
from jax import lax
from jax.experimental import pallas as pl
from jax.experimental.pallas import tpu as pltpu


def _round_up(x, m):
    return (x + m - 1) // m * m


def _embed_kernel(idx_ref, bd_ref, out_ref):
    # idx_ref : (TB, nh)          int32   current batch tile of action ids
    # bd_ref  : (nh*V_pad, nh*E)  float32 block-diagonal stacked tables
    #                                     (constant index_map -> loaded once)
    # out_ref : (TB, nh*E)        float32 lane-dense fused output tile
    tb, nh = idx_ref.shape
    v_pad = bd_ref.shape[0] // nh

    idx = idx_ref[...]                                        # (TB, nh)
    iota_v = lax.broadcasted_iota(jnp.int32, (tb, v_pad), 1)  # (TB, V_pad)

    # Per-head one-hots concatenated along lanes -> (TB, nh*V_pad).
    onehot = jnp.concatenate(
        [(idx[:, h:h + 1] == iota_v).astype(jnp.float32) for h in range(nh)],
        axis=-1)

    # Single MXU matmul for all heads; one unmasked full-width store.
    out_ref[...] = jnp.dot(onehot, bd_ref[...],
                           preferred_element_type=jnp.float32)


def prev_action_encode(prev_act, tables_stacked, n_embed, *, tb=512):
    """prev_act: (bs, na, nh) ints. tables_stacked: (nh, V_pad, n_embed) f32."""
    bs, na, nh = prev_act.shape
    v_pad = tables_stacked.shape[1]
    B = bs * na

    # Natural-layout indices (no transpose): (B, nh) int32.
    idx = prev_act.reshape(B, nh).astype(jnp.int32)

    # Tile the flattened batch; pad with index 0 (valid row) and slice it off.
    tb = min(tb, _round_up(B, 8))
    b_pad = _round_up(B, tb)
    if b_pad != B:
        idx = jnp.pad(idx, ((0, b_pad - B), (0, 0)))

    # Block-diagonal fused table: head h occupies rows [h*V_pad, (h+1)*V_pad)
    # and cols [h*E, (h+1)*E). Built once outside the kernel.
    bd = jnp.zeros((nh * v_pad, nh * n_embed), jnp.float32)
    for h in range(nh):
        bd = bd.at[h * v_pad:(h + 1) * v_pad,
                   h * n_embed:(h + 1) * n_embed].set(tables_stacked[h])

    n_tiles = b_pad // tb
    cost = pl.CostEstimate(
        flops=2 * b_pad * (nh * v_pad) * (nh * n_embed),
        transcendentals=0,
        bytes_accessed=idx.size * 4 + bd.size * 4 + b_pad * nh * n_embed * 4,
    )

    out = pl.pallas_call(
        _embed_kernel,
        out_shape=jax.ShapeDtypeStruct((b_pad, nh * n_embed), jnp.float32),
        grid_spec=pltpu.PrefetchScalarGridSpec(
            num_scalar_prefetch=0,
            grid=(n_tiles,),
            in_specs=[
                pl.BlockSpec((tb, nh), lambda i: (i, 0)),
                pl.BlockSpec((nh * v_pad, nh * n_embed), lambda i: (0, 0)),
            ],
            out_specs=pl.BlockSpec((tb, nh * n_embed), lambda i: (i, 0)),
        ),
        compiler_params=pltpu.CompilerParams(
            dimension_semantics=("parallel",)),
        cost_estimate=cost,
    )(idx, bd)

    # (B_pad, nh*E) -> (bs, na, nh*E): contiguous reshape, no transpose.
    return out[:B].reshape(bs, na, nh * n_embed)


if __name__ == "__main__":
    # Small synthetic config consistent with the module's __init__.
    n_legal = OrderedDict([("move", 9), ("target", 17), ("use", 12), ("sell", 5)])
    n_embed = 16
    bs, na = 2, 8
    nh = len(n_legal)

    key = jax.random.PRNGKey(0)

    # Per-head embedding tables (nn.Embedding default init ~ N(0,1)),
    # zero-padded to a common vocab size so they can be stacked.
    V_pad = _round_up(max(n_legal.values()), 128)
    tables = []
    for name, V in n_legal.items():
        key, sub = jax.random.split(key)
        tab = jax.random.normal(sub, (V, n_embed), dtype=jnp.float32)
        tables.append(jnp.pad(tab, ((0, V_pad - V), (0, 0))))
    tables_stacked = jnp.stack(tables, axis=0)          # (nh, V_pad, E)

    # Deterministic action ids, each head bounded by its own vocab size.
    cols = []
    for name, V in n_legal.items():
        key, sub = jax.random.split(key)
        cols.append(jax.random.randint(sub, (bs, na, 1), 0, V, dtype=jnp.int32))
    prev_act = jnp.concatenate(cols, axis=-1)           # (bs, na, nh)

    out = prev_action_encode(prev_act, tables_stacked, n_embed)
    out = jax.block_until_ready(out)

    # Pure-JAX reference (plain gather + concat) to validate semantics.
    flat = prev_act.reshape(-1, nh)
    ref = jnp.concatenate(
        [tables_stacked[i][flat[:, i]] for i in range(nh)], axis=-1
    ).reshape(bs, na, nh * n_embed)

    assert out.shape == (bs, na, nh * n_embed), out.shape
    assert jnp.allclose(out, ref, atol=1e-5), "mismatch vs reference"
    print("KERNEL_OK")
</pallas_src>

<mosaic_0001>
module attributes {stable_mosaic.version = 11 : i64} {
  func.func @_embed_kernel(%arg0: i32, %arg1: memref<16x4xi32, #tpu.memory_space<vmem>>, %arg2: memref<512x64xf32, #tpu.memory_space<vmem>>, %arg3: memref<16x64xf32, #tpu.memory_space<vmem>>) attributes {dimension_semantics = [#tpu.dimension_semantics<parallel>], iteration_bounds = array<i64: 1>, scalar_prefetch = 0 : i64, scratch_operands = 0 : i64, tpu.core_type = #tpu.core_type<tc>, window_params = [{transform_indices = @transform_0, window_bounds = array<i64: 16, 4>}, {pipeline_mode = #tpu.pipeline_mode<synchronous>, transform_indices = @transform_1, window_bounds = array<i64: 512, 64>}, {transform_indices = @transform_2, window_bounds = array<i64: 16, 64>}]} {
    %c0 = arith.constant 0 : index
    %c0_0 = arith.constant 0 : index
    %0 = vector.load %arg1[%c0, %c0_0] : memref<16x4xi32, #tpu.memory_space<vmem>>, vector<16x4xi32>
    %1 = tpu.iota {dimensions = array<i32: 1>} : vector<16x128xi32>
    %2 = vector.extract_strided_slice %0 {offsets = [0, 0], sizes = [16, 1], strides = [1, 1]} : vector<16x4xi32> to vector<16x1xi32>
    %3 = vector.broadcast %2 : vector<16x1xi32> to vector<16x128xi32>
    %4 = arith.cmpi eq, %3, %1 : vector<16x128xi32>
    %5 = arith.extui %4 : vector<16x128xi1> to vector<16x128xi32>
    %6 = arith.sitofp %5 : vector<16x128xi32> to vector<16x128xf32>
    %7 = vector.extract_strided_slice %0 {offsets = [0, 1], sizes = [16, 1], strides = [1, 1]} : vector<16x4xi32> to vector<16x1xi32>
    %8 = vector.broadcast %7 : vector<16x1xi32> to vector<16x128xi32>
    %9 = arith.cmpi eq, %8, %1 : vector<16x128xi32>
    %10 = arith.extui %9 : vector<16x128xi1> to vector<16x128xi32>
    %11 = arith.sitofp %10 : vector<16x128xi32> to vector<16x128xf32>
    %12 = vector.extract_strided_slice %0 {offsets = [0, 2], sizes = [16, 1], strides = [1, 1]} : vector<16x4xi32> to vector<16x1xi32>
    %13 = vector.broadcast %12 : vector<16x1xi32> to vector<16x128xi32>
    %14 = arith.cmpi eq, %13, %1 : vector<16x128xi32>
    %15 = arith.extui %14 : vector<16x128xi1> to vector<16x128xi32>
    %16 = arith.sitofp %15 : vector<16x128xi32> to vector<16x128xf32>
    %17 = vector.extract_strided_slice %0 {offsets = [0, 3], sizes = [16, 1], strides = [1, 1]} : vector<16x4xi32> to vector<16x1xi32>
    %18 = vector.broadcast %17 : vector<16x1xi32> to vector<16x128xi32>
    %19 = arith.cmpi eq, %18, %1 : vector<16x128xi32>
    %20 = arith.extui %19 : vector<16x128xi1> to vector<16x128xi32>
    %21 = arith.sitofp %20 : vector<16x128xi32> to vector<16x128xf32>
    %22 = tpu.concatenate %6, %11, %16, %21 in 1 : vector<16x128xf32>, vector<16x128xf32>, vector<16x128xf32>, vector<16x128xf32> -> vector<16x512xf32>
    %c0_1 = arith.constant 0 : index
    %c0_2 = arith.constant 0 : index
    %23 = vector.load %arg2[%c0_1, %c0_2] : memref<512x64xf32, #tpu.memory_space<vmem>>, vector<512x64xf32>
    %cst = arith.constant dense<0.000000e+00> : vector<16x64xf32>
    %24 = tpu.matmul %22, %23, %cst {dimension_numbers = #tpu.dot_dimension_numbers<[1], [0], [0], [1], [0, 0, 1, 1], [], []>} : vector<16x512xf32>, vector<512x64xf32>, vector<16x64xf32> -> vector<16x64xf32>
    %c0_3 = arith.constant 0 : index
    %c0_4 = arith.constant 0 : index
    %25 = vector.load %arg3[%c0_3, %c0_4] : memref<16x64xf32, #tpu.memory_space<vmem>>, vector<16x64xf32>
    tpu.vector_store %arg3[%c0_3, %c0_4], %24 {strides = array<i32>} : memref<16x64xf32, #tpu.memory_space<vmem>>, vector<16x64xf32>,
    return
  }
  func.func @transform_0(%arg0: i32) -> (i32, i32) {
    %c0_i32 = arith.constant 0 : i32
    %c0_i32_0 = arith.constant 0 : i32
    return %arg0, %c0_i32 : i32, i32
  }
  func.func @transform_1(%arg0: i32) -> (i32, i32) {
    %c0_i32 = arith.constant 0 : i32
    %c0_i32_0 = arith.constant 0 : i32
    %c0_i32_1 = arith.constant 0 : i32
    return %c0_i32, %c0_i32_0 : i32, i32
  }
  func.func @transform_2(%arg0: i32) -> (i32, i32) {
    %c0_i32 = arith.constant 0 : i32
    %c0_i32_0 = arith.constant 0 : i32
    return %arg0, %c0_i32 : i32, i32
  }
}

</mosaic_0001>

<bundles_post_ra>
// kernel: tpu_custom_call.1
= control target key start
LH: loop header
LB: loop body
LE: loop exit
PB: predicated region body
PF: predicated region fallthrough
CT: control target
= control target key end

     0   :  { %v493_v1 = vmov 1   ;;  %v494_v2 = vmov 0   ;;  %v495_v24 = vmov 2   ;;  %v496_v25 = vmov 3   ;;  %s730_s0 = inlined_call_operand.vmem [shape: s32[16,4], index: 0, kind: input, shape index: {}]   ;;  %s731_s1 = inlined_call_operand.vmem [shape: f32[512,64], index: 1, kind: input, shape index: {}]   ;;  %s732_s2 = inlined_call_operand.hbm [shape: f32[16,64], index: 2, kind: output, shape index: {}]  }
   0x1   :  { %v12_v0 = vld [vmem:[%s730_s0] sm:$0xff]  ;;  %461 = vset.pattern.permute.xlu0 %v493_v1  ;;  %463 = vset.pattern.permute.xlu1 %v494_v2  ;;  %v81_v4 = vld [vmem:[%s731_s1 + $0x88] sm:$0xff]  ;;  %v82_v8 = vld [vmem:[%s731_s1 + $0x90] sm:$0xff] }
   0x2   :  { %v80_v3 = vld [vmem:[%s731_s1 + $0x80] sm:$0xff]  ;;  %17 = vperm.xlu1 %463, %v12_v0   ;;  %29 = vperm.xlu0 %461, %v12_v0   ;;  %v65_v7 = vld [vmem:[%s731_s1 + $0x8] sm:$0xff]  ;;  %v83_v9 = vld [vmem:[%s731_s1 + $0x98] sm:$0xff] }
   0x3   :  { %v64_v5 = vld [vmem:[%s731_s1] sm:$0xff]  ;;  %v389_v6 = vpack.c.bf16 %v81_v4, %v80_v3  ;;  %v66_v11 = vld [vmem:[%s731_s1 + $0x10] sm:$0xff]  ;;  %v67_v12 = vld [vmem:[%s731_s1 + $0x18] sm:$0xff]  ;;  %v393_v14 = vpack.c.bf16 %v83_v9, %v82_v8 }
   0x4   :  { %v391_v10 = vpack.c.bf16 %v65_v7, %v64_v5  ;;  %v112_v13 = vld [vmem:[%s731_s1 + $0x180] sm:$0xff]  ;;  %v113_v15 = vld [vmem:[%s731_s1 + $0x188] sm:$0xff]  ;;  %v395_v18 = vpack.c.bf16 %v67_v12, %v66_v11  ;;  %v114_v28 = vld [vmem:[%s731_s1 + $0x190] sm:$0xff] }
   0x5   :  { %390 = vmatprep.subr.bf16.mxu0 %v389_v6  ;;  %v96_v16 = vld [vmem:[%s731_s1 + $0x100] sm:$0xff]  ;;  %v97_v17 = vld [vmem:[%s731_s1 + $0x108] sm:$0xff]  ;;  %v421_v19 = vpack.c.bf16 %v113_v15, %v112_v13  ;;  %v115_v29 = vld [vmem:[%s731_s1 + $0x198] sm:$0xff] }
   0x6   :  { %392 = vmatpush3.bf16.msra.mxu0 %v391_v10  ;;  %v423_v20 = vpack.c.bf16 %v97_v17, %v96_v16  ;;  %v84_v21 = vld [vmem:[%s731_s1 + $0xa0] sm:$0xff]  ;;  %v85_v22 = vld [vmem:[%s731_s1 + $0xa8] sm:$0xff]  ;;  %464 = vset.pattern.permute.xlu1 %v495_v24  ;;  %v425_v30 = vpack.c.bf16 %v115_v29, %v114_v28  ;;  %v98_v31 = vld [vmem:[%s731_s1 + $0x110] sm:$0xff] }
   0x7   :  { %v68_v23 = vld [vmem:[%s731_s1 + $0x20] sm:$0xff]  ;;  %462 = vset.pattern.permute.xlu0 %v496_v25  ;;  %v397_v26 = vpack.c.bf16 %v85_v22, %v84_v21  ;;  %v69_v27 = vld [vmem:[%s731_s1 + $0x28] sm:$0xff]  ;;  %41 = vperm.xlu1 %464, %v12_v0   ;;  %v99_v32 = vld [vmem:[%s731_s1 + $0x118] sm:$0xff] }
   0x8   :  { %53 = vperm.xlu0 %462, %v12_v0   ;;  %v86_v33 = vld [vmem:[%s731_s1 + $0xb0] sm:$0xff]  ;;  %v13_v34 = vld [vmem:[%s730_s0 + $0x8] sm:$0xff]  ;;  %394 = vmatprep.subr.bf16.mxu0 %v393_v14  ;;  %v87_v35 = vld [vmem:[%s731_s1 + $0xb8] sm:$0xff]  ;;  %v399_v36 = vpack.c.bf16 %v69_v27, %v68_v23  ;;  %v427_v37 = vpack.c.bf16 %v99_v32, %v98_v31 }
   0x9   :  { %422 = vmatprep.subr.bf16.mxu1 %v421_v19  ;;  %v116_v38 = vld [vmem:[%s731_s1 + $0x1a0] sm:$0xff]  ;;  %v117_v39 = vld [vmem:[%s731_s1 + $0x1a8] sm:$0xff]  ;;  %v401_v40 = vpack.c.bf16 %v87_v35, %v86_v33  ;;  %v70_v41 = vld [vmem:[%s731_s1 + $0x30] sm:$0xff] }
   0xa   :  { %396 = vmatpush3.bf16.msra.mxu0 %v395_v18  ;;  %424 = vmatpush3.bf16.msra.mxu1 %v423_v20  ;;  %v71_v42 = vld [vmem:[%s731_s1 + $0x38] sm:$0xff]  ;;  %v429_v43 = vpack.c.bf16 %v117_v39, %v116_v38  ;;  %v100_v44 = vld [vmem:[%s731_s1 + $0x120] sm:$0xff]  ;;  %v101_v45 = vld [vmem:[%s731_s1 + $0x128] sm:$0xff] }
   0xb   :  { %398 = vmatprep.subr.bf16.mxu0 %v397_v26  ;;  %426 = vmatprep.subr.bf16.mxu1 %v425_v30  ;;  %v88_v46 = vld [vmem:[%s731_s1 + $0xc0] sm:$0xff]  ;;  %v89_v47 = vld [vmem:[%s731_s1 + $0xc8] sm:$0xff]  ;;  %v118_v48 = vld [vmem:[%s731_s1 + $0x1b0] sm:$0xff]  ;;  %v403_v50 = vpack.c.bf16 %v71_v42, %v70_v41  ;;  %v431_v51 = vpack.c.bf16 %v101_v45, %v100_v44 }
   0xc   :  { %465 = vset.pattern.permute.xlu1 %v493_v1  ;;  %56 = vperm.xlu0 %462, %v13_v34   ;;  %v119_v49 = vld [vmem:[%s731_s1 + $0x1b8] sm:$0xff]  ;;  %v405_v52 = vpack.c.bf16 %v89_v47, %v88_v46  ;;  %v72_v53 = vld [vmem:[%s731_s1 + $0x40] sm:$0xff]  ;;  %v73_v54 = vld [vmem:[%s731_s1 + $0x48] sm:$0xff] }
   0xd   :  { %32 = vperm.xlu1 %465, %v13_v34   ;;  %v102_v55 = vld [vmem:[%s731_s1 + $0x130] sm:$0xff]  ;;  %v433_v56 = vpack.c.bf16 %v119_v49, %v118_v48  ;;  %v103_v57 = vld [vmem:[%s731_s1 + $0x138] sm:$0xff]  ;;  %v120_v60 = vld [vmem:[%s731_s1 + $0x1c0] sm:$0xff]  ;;  %v407_v62 = vpack.c.bf16 %v73_v54, %v72_v53 }
   0xe   :  { %400 = vmatpush3.bf16.msra.mxu0 %v399_v36  ;;  %428 = vmatpush3.bf16.msra.mxu1 %v427_v37  ;;  %v90_v58 = vld [vmem:[%s731_s1 + $0xd0] sm:$0xff]  ;;  %v91_v59 = vld [vmem:[%s731_s1 + $0xd8] sm:$0xff]  ;;  %v121_v61 = vld [vmem:[%s731_s1 + $0x1c8] sm:$0xff]  ;;  %v435_v63 = vpack.c.bf16 %v103_v57, %v102_v55 }
   0xf   :  { %402 = vmatprep.subr.bf16.mxu0 %v401_v40  ;;  %430 = vmatprep.subr.bf16.mxu1 %v429_v43  ;;  %v409_v0 = vpack.c.bf16 %v91_v59, %v90_v58  ;;  %v74_v1 = vld [vmem:[%s731_s1 + $0x50] sm:$0xff]  ;;  %v104_v3 = vld [vmem:[%s731_s1 + $0x140] sm:$0xff]  ;;  %v437_v4 = vpack.c.bf16 %v121_v61, %v120_v60  ;;  %v105_v5 = vld [vmem:[%s731_s1 + $0x148] sm:$0xff] }
  0x10   :  { %467 = vset.pattern.permute.xlu0 %v495_v24  ;;  %v92_v6 = vld [vmem:[%s731_s1 + $0xe0] sm:$0xff]  ;;  %v93_v7 = vld [vmem:[%s731_s1 + $0xe8] sm:$0xff]  ;;  %v122_v8 = vld [vmem:[%s731_s1 + $0x1d0] sm:$0xff]  ;;  %v439_v12 = vpack.c.bf16 %v105_v5, %v104_v3 }
  0x11   :  { %466 = vset.pattern.permute.xlu1 %v494_v2  ;;  %44 = vperm.xlu0 %467, %v13_v34   ;;  %v75_v2 = vld [vmem:[%s731_s1 + $0x58] sm:$0xff]  ;;  %v76_v11 = vld [vmem:[%s731_s1 + $0x60] sm:$0xff]  ;;  %v413_v13 = vpack.c.bf16 %v93_v7, %v92_v6  ;;  %v77_v14 = vld [vmem:[%s731_s1 + $0x68] sm:$0xff] }
  0x12   :  { %20 = vperm.xlu1 %466, %v13_v34   ;;  %404 = vmatpush3.bf16.msra.mxu0 %v403_v50  ;;  %v123_v9 = vld [vmem:[%s731_s1 + $0x1d8] sm:$0xff]  ;;  %v411_v10 = vpack.c.bf16 %v75_v2, %v74_v1  ;;  %v106_v15 = vld [vmem:[%s731_s1 + $0x150] sm:$0xff] }
  0x13   :  { %432 = vmatpush3.bf16.msra.mxu1 %v431_v51  ;;  %406 = vmatprep.subr.bf16.mxu0 %v405_v52 }
  0x14   :  { %434 = vmatprep.subr.bf16.mxu1 %v433_v56 }
  0x15   :  { %468 = vset.pattern.permute.xlu0 %v496_v25 }
  0x16   :  { %408 = vmatpush3.bf16.msra.mxu0 %v407_v62 }
  0x17   :  { %436 = vmatpush3.bf16.msra.mxu1 %v435_v63  ;;  %410 = vmatprep.subr.bf16.mxu0 %v409_v0 }
  0x18   :  { %7 = vsyncpa [#allocation3], 0  ;;  %438 = vmatprep.subr.bf16.mxu1 %v437_v4  ;;  %v441_v16 = vpack.c.bf16 %v123_v9, %v122_v8  ;;  %v107_v17 = vld [vmem:[%s731_s1 + $0x158] sm:$0xff]  ;;  %v94_v18 = vld [vmem:[%s731_s1 + $0xf0] sm:$0xff]  ;;  %v415_v22 = vpack.c.bf16 %v77_v14, %v76_v11  ;;  %v14_v38 = vlaneseq  ;;  %v497_v42 = vmov 1.0  }
  0x19   :  { %v95_v19 = vld [vmem:[%s731_s1 + $0xf8] sm:$0xff]  ;;  %v124_v20 = vld [vmem:[%s731_s1 + $0x1e0] sm:$0xff]  ;;  %v125_v21 = vld [vmem:[%s731_s1 + $0x1e8] sm:$0xff]  ;;  %v443_v23 = vpack.c.bf16 %v107_v17, %v106_v15  ;;  %vm278_vm8 = vcmask 523264  }
  0x1a   :  { %412 = vmatpush3.bf16.msra.mxu0 %v411_v10  ;;  %v417_v24 = vpack.c.bf16 %v95_v19, %v94_v18  ;;  %v78_v25 = vld [vmem:[%s731_s1 + $0x70] sm:$0xff]  ;;  %v79_v26 = vld [vmem:[%s731_s1 + $0x78] sm:$0xff]  ;;  %v445_v27 = vpack.c.bf16 %v125_v21, %v124_v20  ;;  %v108_v28 = vld [vmem:[%s731_s1 + $0x160] sm:$0xff]  ;;  %v15_v39 = vand.u32 127, %v14_v38 }
  0x1b   :  { %440 = vmatpush3.bf16.msra.mxu1 %v439_v12  ;;  %414 = vmatprep.subr.bf16.mxu0 %v413_v13  ;;  %v109_v29 = vld [vmem:[%s731_s1 + $0x168] sm:$0xff]  ;;  %v126_v30 = vld [vmem:[%s731_s1 + $0x1f0] sm:$0xff]  ;;  %v127_v31 = vld [vmem:[%s731_s1 + $0x1f8] sm:$0xff]  ;;  %v419_v32 = vpack.c.bf16 %v79_v26, %v78_v25 }
  0x1c   :  { %442 = vmatprep.subr.bf16.mxu1 %v441_v16  ;;  %v447_v33 = vpack.c.bf16 %v109_v29, %v108_v28  ;;  %v449_v34 = vpack.c.bf16 %v127_v31, %v126_v30  ;;  %v110_v35 = vld [vmem:[%s731_s1 + $0x170] sm:$0xff]  ;;  %v111_v36 = vld [vmem:[%s731_s1 + $0x178] sm:$0xff]  ;;  %s498_s1 = smov [#allocation2]  }
  0x1d   :  { %v451_v37 = vpack.c.bf16 %v111_v36, %v110_v35  ;;  %s286_s26 = sshll.u32 %s498_s1, 4  ;;  %s287_s26 = int_to_ptr.vmem [resolvable:$true] %s286_s26 }
  0x1e   :  { %416 = vmatpush3.bf16.msra.mxu0 %v415_v22  ;;  %s469_s27 = scalar_lea.vmem %s287_s26, 256  ;;  %p474_p1 = scmp.lt.s32.totalorder %s287_s26, %s287_s26 }
  0x1f   :  { %444 = vmatpush3.bf16.msra.mxu1 %v443_v23  ;;  %418 = vmatprep.subr.bf16.mxu0 %v417_v24  ;;  %p470_p0 = scmp.ne.s32.totalorder %s287_s26, %s469_s27  ;;  %p475_p2 = scmp.lt.s32.totalorder %s469_s27, %s469_s27 }
  0x20   :  { %446 = vmatprep.subr.bf16.mxu1 %v445_v27 }
  0x21   :  { %p476_p3 = por %p475_p2, %p474_p1 }
  0x22   :  { %420 = vmatpush3.bf16.msra.mxu0 %v419_v32 }
  0x23   :  { %448 = vmatpush3.bf16.msra.mxu1 %v447_v33  ;;  %p477_p4 = pnand %p476_p3, %p470_p0 }
  0x24   :  { %450 = vmatprep.subr.bf16.mxu1 %v449_v34 }
  0x27   :  { %452 = vmatpush3.bf16.msra.mxu1 %v451_v37 }
  0x81   :  { %v18_v40 = vpop.permute.xlu1 %17  ;;  %v30_v41 = vpop.permute.xlu0 %29 }
  0x82   :  { %vm22_vm0 = vcmp.eq.s32.totalorder %v18_v40, %v15_v39  ;;  %vm34_vm1 = vcmp.eq.s32.totalorder %v30_v41, %v15_v39 }
  0x83   :  { %305 = vmatprep.mubr.msk.f32.mxu0 %vm34_vm1, %v497_v42 }
  0x84   :  { %306 = vmatmul.mubr.msk.f32.vlgmr.msra.gmra.mrb[0].mxu0 %vm22_vm0, %v497_v42 }
  0x86   :  { %v42_v43 = vpop.permute.xlu1 %41 }
  0x87   :  { %v54_v44 = vpop.permute.xlu0 %53  ;;  %vm46_vm2 = vcmp.eq.s32.totalorder %v42_v43, %v15_v39 }
  0x88   :  { %vm58_vm3 = vcmp.eq.s32.totalorder %v54_v44, %v15_v39 }
  0x89   :  { %309 = vmatprep.mubr.msk.f32.mxu1 %vm58_vm3, %v497_v42 }
  0x8a   :  { %310 = vmatmul.mubr.msk.f32.vlgmr.msra.gmra.mrb[0].mxu1 %vm46_vm2, %v497_v42 }
  0x8b   :  { %v57_v45 = vpop.permute.xlu0 %56 }
  0x8c   :  { %vm59_vm4 = vcmp.eq.s32.totalorder %v57_v45, %v15_v39  ;;  %v33_v46 = vpop.permute.xlu1 %32 }
  0x8d   :  { %vm35_vm5 = vcmp.eq.s32.totalorder %v33_v46, %v15_v39  ;;  %311 = vmatprep.mubr.msk.f32.mxu1 %vm59_vm4, %v497_v42 }
  0x8e   :  { %307 = vmatprep.mubr.msk.f32.mxu0 %vm35_vm5, %v497_v42 }
  0x90   :  { %v45_v47 = vpop.permute.xlu0 %44 }
  0x91   :  { %vm47_vm6 = vcmp.eq.s32.totalorder %v45_v47, %v15_v39  ;;  %v21_v48 = vpop.permute.xlu1 %20 }
  0x92   :  { %vm23_vm7 = vcmp.eq.s32.totalorder %v21_v48, %v15_v39  ;;  %312 = vmatmul.mubr.msk.f32.gmra.mrb[2].mxu1 %vm47_vm6, %v497_v42 }
  0x93   :  { %308 = vmatmul.mubr.msk.f32.gmra.mrb[2].mxu0 %vm23_vm7, %v497_v42 }
 0x157   :  { %v345_v49 = vpop.f32.mrb[0].mxu0 }
 0x158   :  { %v346_v50 = vpop.f32.mrb[1].mxu0 }
 0x159   :  { %v347_v51 = vadd.f32 %v346_v50, %v345_v49 }
 0x15d   :  { %v383_v52 = vpop.f32.mrb[0].mxu1 }
 0x15e   :  { %v384_v53 = vpop.f32.mrb[1].mxu1 }
 0x15f   :  { %v385_v54 = vadd.f32 %v384_v53, %v383_v52 }
 0x161   :  { %v270_v55 = vadd.f32 %v385_v54, %v347_v51 }
 0x163   :  { %279 = vst.msk [vmem:[#allocation2] sm:$0xff] %vm278_vm8, %v270_v55 }
 0x165   :  { %v386_v56 = vpop.f32.mrb[2].mxu1 }
 0x166   :  { %v348_v57 = vpop.f32.mrb[2].mxu0  ;;  %v387_v58 = vpop.f32.mrb[3].mxu1 }
 0x167   :  { %v388_v59 = vadd.f32 %v387_v58, %v386_v56  ;;  %v349_v60 = vpop.f32.mrb[3].mxu0 }
 0x168   :  { %v350_v61 = vadd.f32 %v349_v60, %v348_v57 }
 0x16a   :  { %v275_v62 = vadd.f32 %v388_v59, %v350_v61 }
 0x16c   :  { %280 = vst.msk [vmem:[#allocation2 + $0x8] sm:$0xff] %vm278_vm8, %v275_v62 }
 0x16d   :  { %480 = shalt.err (!%p477_p4)
}
 0x16e   :  { %s481_s30 = scalar_lea.hbm %s732_s2, 256 }
 0x16f   :  { %p482_p5 = scmp.ne.s32.totalorder %s732_s2, %s481_s30  ;;  %p485_p6 = scmp.lt.u32.totalorder %s481_s30, %s732_s2 }
 0x171   :  { %p487_p7 = pnand %p485_p6, %p482_p5 }
 0x173   :  { %490 = shalt.err (!%p487_p7)
}
 0x174   :  { %s499_s6 = smov 128   ;;  %s500_s7 = smov 8  }
 0x175   :  { %292 = dma.vmem_to_hbm [thread:$0]  %s287_s26, 256, %s732_s2, [#allocation3], %s499_s6, %s499_s6, %s500_s7  }
 0x176   :  { %491 = dma.done.wait [#allocation3], 256  }
 0x177   :  { %492 = vsyncadd [#allocation3], 4294967040 }
 0x178   :  { %296 = vsyncpa [#allocation3], 1 }

</bundles_post_ra>
